<compile_context>
chip_gen: v5e
topology: v5e:2x2
jax: 0.10.0
libtpu: 0.0.40
codegen_flags: <defaults>
</compile_context>

<pallas_src>
import functools

import jax
import jax.numpy as jnp
from jax.experimental import pallas as pl
from jax.experimental.pallas import tpu as pltpu

_LANE = 128


def _round_up(x, m):
    return ((x + m - 1) // m) * m


def _actor_kernel(x_ref, w1_ref, b1_ref, w2_ref, b2_ref, w3_ref, b3_ref, o_ref,
                  *, categorical, valid_rows):
    """One batch tile: x(TM,obs_dim) @ W1 -> relu -> @ W2 -> relu -> @ W3 -> head."""
    wdt = w1_ref.dtype  # bf16 weights feed the MXU natively; f32 is a no-op cast.
    x = x_ref[...]

    # Layer 1: Linear + ReLU  (Dropout(0.02) is identity in eval mode)
    h1 = jnp.dot(x.astype(wdt), w1_ref[...],
                 preferred_element_type=jnp.float32) + b1_ref[...]
    h1 = jnp.maximum(h1, 0.0)

    # Layer 2: Linear + ReLU  (Dropout(0.02) is identity in eval mode)
    h2 = jnp.dot(h1.astype(wdt), w2_ref[...],
                 preferred_element_type=jnp.float32) + b2_ref[...]
    h2 = jnp.maximum(h2, 0.0)

    # Layer 3: Linear (output columns zero-padded to 128 lanes -> unmasked store)
    logits = jnp.dot(h2.astype(wdt), w3_ref[...],
                     preferred_element_type=jnp.float32) + b3_ref[...]

    if categorical:
        # torch.softmax(..., dim=0): softmax over the batch axis. The whole batch
        # lives in this single block; mask batch-padding rows out of the reduction.
        rows = jax.lax.broadcasted_iota(jnp.int32, logits.shape, 0)
        masked = jnp.where(rows < valid_rows, logits, jnp.float32(-1e30))
        m = jnp.max(masked, axis=0, keepdims=True)
        e = jnp.exp(masked - m)
        o_ref[...] = (e / jnp.sum(e, axis=0, keepdims=True)).astype(o_ref.dtype)
    else:
        o_ref[...] = jnp.tanh(logits).astype(o_ref.dtype)


def actor_forward(obs, params, *, categorical=False, block_m=256, weight_dtype=None):
    """Fused MLP forward. Batch-tiled grid; weights stay VMEM-resident across tiles."""
    w1, b1, w2, b2, w3, b3 = params
    batch, obs_dim = obs.shape
    hidden = w1.shape[1]
    act_dim = w3.shape[1]

    # --- lane-dense output head: pad act_dim -> multiple of 128 columns ----------
    act_pad = _round_up(max(act_dim, _LANE), _LANE)
    w3p = jnp.zeros((hidden, act_pad), w3.dtype).at[:, :act_dim].set(w3)
    b3p = jnp.zeros((1, act_pad), b3.dtype).at[:, :act_dim].set(b3)

    # Optional low-precision weights (v6e/v7x); biases + element-wise math stay f32.
    if weight_dtype is not None:
        w1 = w1.astype(weight_dtype)
        w2 = w2.astype(weight_dtype)
        w3p = w3p.astype(weight_dtype)

    # --- batch tiling -------------------------------------------------------------
    if categorical:
        # softmax over axis 0 requires the whole batch in one block.
        tm = _round_up(batch, 8)
    else:
        tm = min(_round_up(block_m, 8), _round_up(batch, 8))
    batch_pad = _round_up(batch, tm)
    if batch_pad != batch:
        obs = jnp.pad(obs, ((0, batch_pad - batch), (0, 0)))
    grid = (batch_pad // tm,)

    full = lambda a: pl.BlockSpec(a.shape, lambda i: (0,) * a.ndim)  # VMEM-resident

    kernel = functools.partial(_actor_kernel, categorical=categorical,
                               valid_rows=batch)

    out = pl.pallas_call(
        kernel,
        out_shape=jax.ShapeDtypeStruct((batch_pad, act_pad), jnp.float32),
        grid=grid,
        in_specs=[
            pl.BlockSpec((tm, obs_dim), lambda i: (i, 0)),   # streamed per tile
            full(w1), full(b1), full(w2), full(b2), full(w3p), full(b3p),
        ],
        out_specs=pl.BlockSpec((tm, act_pad), lambda i: (i, 0)),  # lane-dense store
        compiler_params=pltpu.CompilerParams(
            # categorical uses a single full-batch step (reduction over the batch);
            # otherwise the batch axis is embarrassingly parallel (2 TCs on v7x).
            dimension_semantics=(("arbitrary",) if categorical else ("parallel",)),
        ),
    )(obs, w1, b1, w2, b2, w3p, b3p)

    return out[:batch, :act_dim]


def init_params(key, obs_dim, act_dim, hidden=128):
    """Deterministic PyTorch-style Linear init: U(-1/sqrt(fan_in), 1/sqrt(fan_in)).

    Weights are stored (in_features, out_features) so the kernel computes x @ W + b,
    identical to PyTorch's x @ W.T with W of shape (out, in). Biases are (1, out).
    """
    ks = jax.random.split(key, 6)

    def linear(kw, kb, fan_in, fan_out):
        bound = 1.0 / jnp.sqrt(jnp.float32(fan_in))
        w = jax.random.uniform(kw, (fan_in, fan_out), jnp.float32, -bound, bound)
        b = jax.random.uniform(kb, (1, fan_out), jnp.float32, -bound, bound)
        return w, b

    w1, b1 = linear(ks[0], ks[1], obs_dim, hidden)
    w2, b2 = linear(ks[2], ks[3], hidden, hidden)
    w3, b3 = linear(ks[4], ks[5], hidden, act_dim)
    return (w1, b1, w2, b2, w3, b3)


def reference_forward(obs, params, *, categorical=False):
    w1, b1, w2, b2, w3, b3 = params
    h1 = jnp.maximum(obs @ w1 + b1, 0.0)
    h2 = jnp.maximum(h1 @ w2 + b2, 0.0)
    logits = h2 @ w3 + b3
    return jax.nn.softmax(logits, axis=0) if categorical else jnp.tanh(logits)


if __name__ == "__main__":
    key = jax.random.PRNGKey(0)
    k_obs, k_obs_big, k_params = jax.random.split(key, 3)

    obs_dim, act_dim = 32, 8
    params = init_params(k_params, obs_dim, act_dim)

    # --- tiny batch (module-scale shapes): tanh head + categorical head ----------
    obs = jax.random.normal(k_obs, (8, obs_dim), jnp.float32)

    out = actor_forward(obs, params, categorical=False)
    jax.block_until_ready(out)
    ref = reference_forward(obs, params, categorical=False)
    assert out.shape == ref.shape
    assert jnp.allclose(out, ref, atol=1e-5, rtol=1e-5)

    out_cat = actor_forward(obs, params, categorical=True)
    jax.block_until_ready(out_cat)
    ref_cat = reference_forward(obs, params, categorical=True)
    assert jnp.allclose(out_cat, ref_cat, atol=1e-5, rtol=1e-5)

    # --- larger rollout batch: exercises the tiled grid (4 steps, padded rows) ---
    obs_big = jax.random.normal(k_obs_big, (1000, obs_dim), jnp.float32)
    out_big = actor_forward(obs_big, params, categorical=False, block_m=256)
    jax.block_until_ready(out_big)
    ref_big = reference_forward(obs_big, params, categorical=False)
    assert out_big.shape == ref_big.shape
    assert jnp.allclose(out_big, ref_big, atol=1e-5, rtol=1e-5)

    # --- bf16 weights (halves weight DMA on v6e/v7x); f32 accumulation kept ------
    out_bf16 = actor_forward(obs_big, params, categorical=False, block_m=256,
                             weight_dtype=jnp.bfloat16)
    jax.block_until_ready(out_bf16)
    assert jnp.allclose(out_bf16, ref_big, atol=3e-2, rtol=3e-2)

    print("KERNEL_OK")
</pallas_src>

<mosaic_0001>
module attributes {stable_mosaic.version = 11 : i64} {
  func.func @_actor_kernel(%arg0: i32, %arg1: memref<8x32xf32, #tpu.memory_space<vmem>>, %arg2: memref<32x128xf32, #tpu.memory_space<vmem>>, %arg3: memref<1x128xf32, #tpu.memory_space<vmem>>, %arg4: memref<128x128xf32, #tpu.memory_space<vmem>>, %arg5: memref<1x128xf32, #tpu.memory_space<vmem>>, %arg6: memref<128x128xf32, #tpu.memory_space<vmem>>, %arg7: memref<1x128xf32, #tpu.memory_space<vmem>>, %arg8: memref<8x128xf32, #tpu.memory_space<vmem>>) attributes {dimension_semantics = [#tpu.dimension_semantics<parallel>], iteration_bounds = array<i64: 1>, scalar_prefetch = 0 : i64, scratch_operands = 0 : i64, tpu.core_type = #tpu.core_type<tc>, window_params = [{transform_indices = @transform_0, window_bounds = array<i64: 8, 32>}, {pipeline_mode = #tpu.pipeline_mode<synchronous>, transform_indices = @transform_1, window_bounds = array<i64: 32, 128>}, {pipeline_mode = #tpu.pipeline_mode<synchronous>, transform_indices = @transform_2, window_bounds = array<i64: 1, 128>}, {pipeline_mode = #tpu.pipeline_mode<synchronous>, transform_indices = @transform_3, window_bounds = array<i64: 128, 128>}, {pipeline_mode = #tpu.pipeline_mode<synchronous>, transform_indices = @transform_4, window_bounds = array<i64: 1, 128>}, {pipeline_mode = #tpu.pipeline_mode<synchronous>, transform_indices = @transform_5, window_bounds = array<i64: 128, 128>}, {pipeline_mode = #tpu.pipeline_mode<synchronous>, transform_indices = @transform_6, window_bounds = array<i64: 1, 128>}, {transform_indices = @transform_7, window_bounds = array<i64: 8, 128>}]} {
    %c0 = arith.constant 0 : index
    %c0_0 = arith.constant 0 : index
    %0 = vector.load %arg1[%c0, %c0_0] : memref<8x32xf32, #tpu.memory_space<vmem>>, vector<8x32xf32>
    %c0_1 = arith.constant 0 : index
    %c0_2 = arith.constant 0 : index
    %1 = vector.load %arg2[%c0_1, %c0_2] : memref<32x128xf32, #tpu.memory_space<vmem>>, vector<32x128xf32>
    %cst = arith.constant dense<0.000000e+00> : vector<8x128xf32>
    %2 = tpu.matmul %0, %1, %cst {dimension_numbers = #tpu.dot_dimension_numbers<[1], [0], [0], [1], [0, 0, 1, 1], [], []>} : vector<8x32xf32>, vector<32x128xf32>, vector<8x128xf32> -> vector<8x128xf32>
    %c0_3 = arith.constant 0 : index
    %c0_4 = arith.constant 0 : index
    %3 = vector.load %arg3[%c0_3, %c0_4] : memref<1x128xf32, #tpu.memory_space<vmem>>, vector<1x128xf32>
    %4 = vector.broadcast %3 : vector<1x128xf32> to vector<8x128xf32>
    %5 = arith.addf %2, %4 : vector<8x128xf32>
    %cst_5 = arith.constant 0.000000e+00 : f32
    %6 = vector.broadcast %cst_5 : f32 to vector<8x128xf32>
    %7 = arith.maximumf %5, %6 : vector<8x128xf32>
    %c0_6 = arith.constant 0 : index
    %c0_7 = arith.constant 0 : index
    %8 = vector.load %arg4[%c0_6, %c0_7] : memref<128x128xf32, #tpu.memory_space<vmem>>, vector<128x128xf32>
    %cst_8 = arith.constant dense<0.000000e+00> : vector<8x128xf32>
    %9 = tpu.matmul %7, %8, %cst_8 {dimension_numbers = #tpu.dot_dimension_numbers<[1], [0], [0], [1], [0, 0, 1, 1], [], []>} : vector<8x128xf32>, vector<128x128xf32>, vector<8x128xf32> -> vector<8x128xf32>
    %c0_9 = arith.constant 0 : index
    %c0_10 = arith.constant 0 : index
    %10 = vector.load %arg5[%c0_9, %c0_10] : memref<1x128xf32, #tpu.memory_space<vmem>>, vector<1x128xf32>
    %11 = vector.broadcast %10 : vector<1x128xf32> to vector<8x128xf32>
    %12 = arith.addf %9, %11 : vector<8x128xf32>
    %cst_11 = arith.constant 0.000000e+00 : f32
    %13 = vector.broadcast %cst_11 : f32 to vector<8x128xf32>
    %14 = arith.maximumf %12, %13 : vector<8x128xf32>
    %c0_12 = arith.constant 0 : index
    %c0_13 = arith.constant 0 : index
    %15 = vector.load %arg6[%c0_12, %c0_13] : memref<128x128xf32, #tpu.memory_space<vmem>>, vector<128x128xf32>
    %cst_14 = arith.constant dense<0.000000e+00> : vector<8x128xf32>
    %16 = tpu.matmul %14, %15, %cst_14 {dimension_numbers = #tpu.dot_dimension_numbers<[1], [0], [0], [1], [0, 0, 1, 1], [], []>} : vector<8x128xf32>, vector<128x128xf32>, vector<8x128xf32> -> vector<8x128xf32>
    %c0_15 = arith.constant 0 : index
    %c0_16 = arith.constant 0 : index
    %17 = vector.load %arg7[%c0_15, %c0_16] : memref<1x128xf32, #tpu.memory_space<vmem>>, vector<1x128xf32>
    %18 = vector.broadcast %17 : vector<1x128xf32> to vector<8x128xf32>
    %19 = arith.addf %16, %18 : vector<8x128xf32>
    %20 = math.tanh %19 : vector<8x128xf32>
    %c0_17 = arith.constant 0 : index
    %c0_18 = arith.constant 0 : index
    %21 = vector.load %arg8[%c0_17, %c0_18] : memref<8x128xf32, #tpu.memory_space<vmem>>, vector<8x128xf32>
    tpu.vector_store %arg8[%c0_17, %c0_18], %20 {strides = array<i32>} : memref<8x128xf32, #tpu.memory_space<vmem>>, vector<8x128xf32>,
    return
  }
  func.func @transform_0(%arg0: i32) -> (i32, i32) {
    %c0_i32 = arith.constant 0 : i32
    %c0_i32_0 = arith.constant 0 : i32
    return %arg0, %c0_i32 : i32, i32
  }
  func.func @transform_1(%arg0: i32) -> (i32, i32) {
    %c0_i32 = arith.constant 0 : i32
    %c0_i32_0 = arith.constant 0 : i32
    %c0_i32_1 = arith.constant 0 : i32
    return %c0_i32, %c0_i32_0 : i32, i32
  }
  func.func @transform_2(%arg0: i32) -> (i32, i32) {
    %c0_i32 = arith.constant 0 : i32
    %c0_i32_0 = arith.constant 0 : i32
    %c0_i32_1 = arith.constant 0 : i32
    return %c0_i32, %c0_i32_0 : i32, i32
  }
  func.func @transform_3(%arg0: i32) -> (i32, i32) {
    %c0_i32 = arith.constant 0 : i32
    %c0_i32_0 = arith.constant 0 : i32
    %c0_i32_1 = arith.constant 0 : i32
    return %c0_i32, %c0_i32_0 : i32, i32
  }
  func.func @transform_4(%arg0: i32) -> (i32, i32) {
    %c0_i32 = arith.constant 0 : i32
    %c0_i32_0 = arith.constant 0 : i32
    %c0_i32_1 = arith.constant 0 : i32
    return %c0_i32, %c0_i32_0 : i32, i32
  }
  func.func @transform_5(%arg0: i32) -> (i32, i32) {
    %c0_i32 = arith.constant 0 : i32
    %c0_i32_0 = arith.constant 0 : i32
    %c0_i32_1 = arith.constant 0 : i32
    return %c0_i32, %c0_i32_0 : i32, i32
  }
  func.func @transform_6(%arg0: i32) -> (i32, i32) {
    %c0_i32 = arith.constant 0 : i32
    %c0_i32_0 = arith.constant 0 : i32
    %c0_i32_1 = arith.constant 0 : i32
    return %c0_i32, %c0_i32_0 : i32, i32
  }
  func.func @transform_7(%arg0: i32) -> (i32, i32) {
    %c0_i32 = arith.constant 0 : i32
    %c0_i32_0 = arith.constant 0 : i32
    return %arg0, %c0_i32 : i32, i32
  }
}

</mosaic_0001>

<bundles_post_ra>
// kernel: tpu_custom_call.1
= control target key start
LH: loop header
LB: loop body
LE: loop exit
PB: predicated region body
PF: predicated region fallthrough
CT: control target
= control target key end

     0   :  { %12 = vsyncpa [#allocation3], 0  ;;  %s436_s0 = inlined_call_operand.hbm [shape: f32[8,32], index: 0, kind: input, shape index: {}]   ;;  %s437_s1 = inlined_call_operand.hbm [shape: f32[32,128], index: 1, kind: input, shape index: {}]   ;;  %s438_s2 = inlined_call_operand.vmem [shape: f32[1,128], index: 2, kind: input, shape index: {}]   ;;  %s439_s3 = inlined_call_operand.hbm [shape: f32[128,128], index: 3, kind: input, shape index: {}]   ;;  %s440_s4 = inlined_call_operand.vmem [shape: f32[1,128], index: 4, kind: input, shape index: {}]   ;;  %s441_s5 = inlined_call_operand.hbm [shape: f32[128,128], index: 5, kind: input, shape index: {}]   ;;  %s442_s6 = inlined_call_operand.vmem [shape: f32[1,128], index: 6, kind: input, shape index: {}]   ;;  %s443_s7 = inlined_call_operand.hbm [shape: f32[8,128], index: 7, kind: output, shape index: {}]  }
   0x1   :  { %13 = vsyncpa [#allocation6], 0 }
   0x2   :  { %14 = vsyncpa [#allocation9], 0  ;;  %s31_s26 = sshll.u32 %s437_s1, 4  ;;  %s32_s26 = int_to_ptr.hbm [resolvable:$true] %s31_s26 }
   0x3   :  { %15 = vsyncpa [#allocation4], 0  ;;  %s365_s27 = smov [#allocation5]   ;;  %s21_s8 = sshll.u32 %s436_s0, 4  ;;  %s22_s8 = int_to_ptr.hbm [resolvable:$true] %s21_s8 }
   0x4   :  { %s33_s28 = sshll.u32 %s365_s27, 4  ;;  %s366_s9 = smov 128   ;;  %s34_s28 = int_to_ptr.vmem [resolvable:$true] %s33_s28 }
   0x5   :  { %s367_s10 = smov 8   ;;  %s368_s11 = smov [#allocation2]  }
   0x6   :  { %39 = dma.hbm_to_vmem [thread:$0]  %s32_s26, 512, %s34_s28, [#allocation6], %s366_s9, %s366_s9, %s367_s10  }
   0x7   :  { %s23_s12 = sshll.u32 %s368_s11, 4  ;;  %s46_s15 = sshll.u32 %s439_s3, 4  ;;  %s24_s12 = int_to_ptr.vmem [resolvable:$true] %s23_s12  ;;  %s47_s15 = int_to_ptr.hbm [resolvable:$true] %s46_s15 }
   0x8   :  { %26 = dma.hbm_to_vmem [thread:$0]  %s22_s8, 128, %s24_s12, [#allocation3]  }
   0x9   :  { %s61_s17 = sshll.u32 %s441_s5, 4  ;;  %s369_s18 = smov [#allocation7]   ;;  %s62_s17 = int_to_ptr.hbm [resolvable:$true] %s61_s17 }
   0xa   :  { %s48_s19 = sshll.u32 %s369_s18, 4  ;;  %s370_s0 = smov [#allocation8]   ;;  %s49_s19 = int_to_ptr.vmem [resolvable:$true] %s48_s19 }
   0xb   :  { %54 = dma.hbm_to_vmem [thread:$0]  %s47_s15, 2048, %s49_s19, [#allocation6], %s366_s9, %s366_s9, %s367_s10  }
   0xc   :  { %s63_s20 = sshll.u32 %s370_s0, 4  ;;  %s64_s20 = int_to_ptr.vmem [resolvable:$true] %s63_s20 }
   0xd   :  { %69 = dma.hbm_to_vmem [thread:$0]  %s62_s17, 2048, %s64_s20, [#allocation9], %s366_s9, %s366_s9, %s367_s10  }
   0xe   :  { %357 = dma.done.wait [#allocation3], 128  }
   0xf   :  { %358 = vsyncadd [#allocation3], 4294967168 }
  0x10   :  { %359 = dma.done.wait [#allocation6], 2560  }
  0x11   :  { %360 = vsyncadd [#allocation6], 4294964736 }
  0x12   :  { %361 = dma.done.wait [#allocation9], 2048  }
  0x13   :  { %362 = vsyncadd [#allocation9], 4294965248  ;;  %v92_v0 = vld [vmem:[#allocation5 + $0x18] sm:$0xff]  ;;  %v91_v1 = vld [vmem:[#allocation5 + $0x10] sm:$0xff]  ;;  %vm97_vm0 = vcmask 261120   ;;  %s371_s24 = smov [#allocation10]  }
  0x14   :  { %113 = vmatpush.msra.mxu0 %v92_v0  ;;  %v137_v2 = vld [vmem:[#allocation7 + $0x78] sm:$0xff]  ;;  %v90_v3 = vld [vmem:[#allocation5 + $0x8] sm:$0xff]  ;;  %v136_v4 = vld [vmem:[#allocation7 + $0x70] sm:$0xff]  ;;  %s210_s25 = sshll.u32 %s371_s24, 4  ;;  %s212_s28 = sshll.u32 %s443_s7, 4  ;;  %s211_s25 = int_to_ptr.vmem [resolvable:$true] %s210_s25  ;;  %s213_s28 = int_to_ptr.hbm [resolvable:$true] %s212_s28 }
  0x15   :  { %142 = vmatpush.msra.mxu1 %v137_v2  ;;  %v135_v5 = vld [vmem:[#allocation7 + $0x68] sm:$0xff]  ;;  %v89_v6 = vld [vmem:[#allocation5] sm:$0xff]  ;;  %v88_v7 = vld [vmem:[#allocation2] sm:$0xff] }
  0x16   :  { %114 = vmatpush.msra.mxu0 %v91_v1  ;;  %v134_v8 = vld [vmem:[#allocation7 + $0x60] sm:$0xff]  ;;  %v133_v9 = vld [vmem:[#allocation7 + $0x58] sm:$0xff]  ;;  %v132_v10 = vld [vmem:[#allocation7 + $0x50] sm:$0xff] }
  0x17   :  { %143 = vmatpush.msra.mxu1 %v136_v4  ;;  %v131_v11 = vld [vmem:[#allocation7 + $0x48] sm:$0xff]  ;;  %v130_v12 = vld [vmem:[#allocation7 + $0x40] sm:$0xff]  ;;  %v129_v13 = vld [vmem:[#allocation7 + $0x38] sm:$0xff] }
  0x18   :  { %115 = vmatpush.msra.mxu0 %v90_v3  ;;  %v128_v14 = vld [vmem:[#allocation7 + $0x30] sm:$0xff]  ;;  %v127_v15 = vld [vmem:[#allocation7 + $0x28] sm:$0xff]  ;;  %v126_v16 = vld [vmem:[#allocation7 + $0x20] sm:$0xff] }
  0x19   :  { %144 = vmatpush.msra.mxu1 %v135_v5  ;;  %v125_v17 = vld [vmem:[#allocation7 + $0x18] sm:$0xff]  ;;  %v124_v18 = vld [vmem:[#allocation7 + $0x10] sm:$0xff]  ;;  %v123_v19 = vld [vmem:[#allocation7 + $0x8] sm:$0xff] }
  0x1a   :  { %116 = vmatpush.msra.mxu0 %v89_v6  ;;  %v122_v20 = vld [vmem:[#allocation7] sm:$0xff]  ;;  %v178_v21 = vld [vmem:[#allocation8 + $0x78] sm:$0xff]  ;;  %v177_v22 = vld [vmem:[#allocation8 + $0x70] sm:$0xff] }
  0x1b   :  { %224 = vmatmul.msk.f32.vlgmr.msra.gmra.mxu0 %vm97_vm0, %v88_v7  ;;  %145 = vmatpush.msra.mxu1 %v134_v8  ;;  %v176_v23 = vld [vmem:[#allocation8 + $0x68] sm:$0xff]  ;;  %v175_v24 = vld [vmem:[#allocation8 + $0x60] sm:$0xff]  ;;  %v174_v25 = vld [vmem:[#allocation8 + $0x58] sm:$0xff] }
  0x1c   :  { %183 = vmatpush.msra.mxu2 %v178_v21  ;;  %v173_v26 = vld [vmem:[#allocation8 + $0x50] sm:$0xff]  ;;  %v172_v27 = vld [vmem:[#allocation8 + $0x48] sm:$0xff]  ;;  %v171_v28 = vld [vmem:[#allocation8 + $0x40] sm:$0xff] }
  0x1d   :  { %146 = vmatpush.msra.mxu1 %v133_v9  ;;  %v170_v29 = vld [vmem:[#allocation8 + $0x38] sm:$0xff]  ;;  %v169_v30 = vld [vmem:[#allocation8 + $0x30] sm:$0xff]  ;;  %v168_v31 = vld [vmem:[#allocation8 + $0x28] sm:$0xff] }
  0x1e   :  { %184 = vmatpush.msra.mxu2 %v177_v22  ;;  %v167_v32 = vld [vmem:[#allocation8 + $0x20] sm:$0xff]  ;;  %v166_v33 = vld [vmem:[#allocation8 + $0x18] sm:$0xff]  ;;  %v165_v38 = vld [vmem:[#allocation8 + $0x10] sm:$0xff] }
  0x1f   :  { %147 = vmatpush.msra.mxu1 %v132_v10  ;;  %v232_v34 = vld [vmem:[%s438_s2] ss:$0 sm:$0xff]  ;;  %v164_v39 = vld [vmem:[#allocation8 + $0x8] sm:$0xff]  ;;  %v163_v40 = vld [vmem:[#allocation8] sm:$0xff] }
  0x20   :  { %185 = vmatpush.msra.mxu2 %v176_v23  ;;  %v233_v41 = vld [vmem:[%s440_s4] ss:$0 sm:$0xff] }
  0x21   :  { %148 = vmatpush.msra.mxu1 %v131_v11  ;;  %v234_v45 = vld [vmem:[%s442_s6] ss:$0 sm:$0xff] }
  0x22   :  { %186 = vmatpush.msra.mxu2 %v175_v24 }
  0x23   :  { %149 = vmatpush.msra.mxu1 %v130_v12 }
  0x24   :  { %187 = vmatpush.msra.mxu2 %v174_v25 }
  0x25   :  { %150 = vmatpush.msra.mxu1 %v129_v13 }
  0x26   :  { %188 = vmatpush.msra.mxu2 %v173_v26 }
  0x27   :  { %151 = vmatpush.msra.mxu1 %v128_v14 }
  0x28   :  { %189 = vmatpush.msra.mxu2 %v172_v27 }
  0x29   :  { %152 = vmatpush.msra.mxu1 %v127_v15 }
  0x2a   :  { %190 = vmatpush.msra.mxu2 %v171_v28 }
  0x2b   :  { %153 = vmatpush.msra.mxu1 %v126_v16 }
  0x2c   :  { %191 = vmatpush.msra.mxu2 %v170_v29 }
  0x2d   :  { %154 = vmatpush.msra.mxu1 %v125_v17 }
  0x2e   :  { %192 = vmatpush.msra.mxu2 %v169_v30 }
  0x2f   :  { %155 = vmatpush.msra.mxu1 %v124_v18 }
  0x30   :  { %193 = vmatpush.msra.mxu2 %v168_v31 }
  0x31   :  { %156 = vmatpush.msra.mxu1 %v123_v19 }
  0x32   :  { %194 = vmatpush.msra.mxu2 %v167_v32 }
  0x33   :  { %157 = vmatpush.msra.mxu1 %v122_v20 }
  0x34   :  { %195 = vmatpush.msra.mxu2 %v166_v33 }
  0x36   :  { %196 = vmatpush.msra.mxu2 %v165_v38 }
  0x38   :  { %197 = vmatpush.msra.mxu2 %v164_v39 }
  0x3a   :  { %198 = vmatpush.msra.mxu2 %v163_v40 }
  0x98   :  { %v118_v35 = vpop.f32.mrf.mxu0 }
  0x99   :  { %v119_v36 = vadd.f32 %v232_v34, %v118_v35 }
  0x9b   :  { %v121_v37 = vmax.f32 %v119_v36, 0.0 }
  0x9d   :  { %158 = vmatmul.f32.vlgmr.msra.gmra.mxu1 %v121_v37 }
 0x11a   :  { %v159_v42 = vpop.f32.mrf.mxu1 }
 0x11b   :  { %v160_v43 = vadd.f32 %v233_v41, %v159_v42 }
 0x11d   :  { %v162_v44 = vmax.f32 %v160_v43, 0.0 }
 0x11f   :  { %199 = vmatmul.f32.vlgmr.msra.gmra.mxu2 %v162_v44 }
 0x1a2   :  { %v200_v46 = vpop.f32.mrf.mxu2 }
 0x1a3   :  { %v201_v47 = vadd.f32 %v234_v45, %v200_v46 }
 0x1a5   :  { %235 = vtanh.f32 %v201_v47 }
 0x1ab   :  { %v236_v48 = vpop.eup %235 }
 0x1ac   :  { %204 = vst [vmem:[#allocation10] sm:$0xff] %v236_v48 }
 0x1ad   :  { %215 = dma.vmem_to_hbm [thread:$0]  %s211_s25, 128, %s213_s28, [#allocation4]  }
 0x1ae   :  { %363 = dma.done.wait [#allocation4], 128  }
 0x1af   :  { %364 = vsyncadd [#allocation4], 4294967168 }
 0x1b0   :  { %220 = vsyncpa [#allocation3], 1 }
 0x1b1   :  { %221 = vsyncpa [#allocation6], 1 }
 0x1b2   :  { %222 = vsyncpa [#allocation9], 1 }
 0x1b3   :  { %223 = vsyncpa [#allocation4], 1 }

</bundles_post_ra>
